<compile_context>
chip_gen: v7x
topology: tpu7x:2x2x1
jax: 0.10.0
libtpu: 0.0.40
codegen_flags: <defaults>
</compile_context>

<pallas_src>
import functools
import math

import jax
import jax.numpy as jnp
from jax import lax
from jax.experimental import pallas as pl
from jax.experimental.pallas import tpu as pltpu


def _rbf_kernel(x_ref, w_ref, c_ref, o_ref, *, fold: bool, inv_h: float):
    # x_ref : (TM, k)     k x-values per lane-dense output row (narrow tile)
    # w_ref : (k, LANE)   one-hot expansion matrix (pre-scaled by 1/h when fold)
    # c_ref : (1, LANE)   -grid/h (fold) or grid (degenerate) tiled along lanes
    # o_ref : (TM, LANE)  lane-dense output block
    xs = jnp.dot(x_ref[...], w_ref[...],
                 preferred_element_type=jnp.float32,
                 precision=lax.Precision.HIGHEST)          # MXU expand (+ scale if fold)
    if fold:
        d = xs + c_ref[...]                                # == (x - grid) / h
    else:
        d = (xs - c_ref[...]) * inv_h                      # G==1: h==0 -> ±inf/nan like torch
    if o_ref.dtype == jnp.bfloat16:
        d = d.astype(jnp.bfloat16)                         # halve EUP/vreg/store pressure
    o_ref[...] = jnp.exp(-(d * d)).astype(o_ref.dtype)


@functools.lru_cache(maxsize=1)
def _vmem_capacity_bytes() -> int:
    """Per-core VMEM capacity; conservative fallback if the query is unavailable."""
    try:
        info = pltpu.get_tpu_info()
        cap = int(getattr(info, "vmem_capacity_bytes", 0) or 0)
        if cap > 0:
            return cap
    except Exception:
        pass
    return 64 << 20      # v7x per-TensorCore size: a safe lower bound everywhere


@functools.partial(jax.jit, static_argnums=(1, 2, 3))
def radial_basis_function(x: jax.Array, grid_min: float, grid_max: float,
                          num_grids: int) -> jax.Array:
    """exp(-(((x[..., None] - grid) / h) ** 2)) with the hot path in Pallas."""
    orig_shape = x.shape
    G = int(num_grids)
    out_dtype = x.dtype if jnp.issubdtype(x.dtype, jnp.floating) else jnp.float32
    M = int(x.size)
    if M == 0:
        return jnp.zeros((*orig_shape, G), dtype=out_dtype)

    # ---- scalar constants ---------------------------------------------------
    h = (float(grid_max) - float(grid_min)) / (G - 1) if G > 1 else 0.0
    fold = (h != 0.0) and math.isfinite(h)            # normal path: fold (x-grid)/h into MXU
    inv_h = (1.0 / h) if h != 0.0 else float("inf")   # h==0 mirrors torch's divide-by-zero

    lane = (128 // math.gcd(G, 128)) * G              # lcm(G, 128): lane-dense output width
    k = lane // G                                     # x values interleaved per output row

    # ---- small constant operands (folded at jit-compile time) ----------------
    grid_vals = jnp.linspace(grid_min, grid_max, G, dtype=jnp.float32)        # (G,)
    grid_row = jnp.tile(grid_vals, k)[None, :]                                # (1, LANE)
    onehot = (jnp.arange(k, dtype=jnp.int32)[:, None]
              == (jnp.arange(lane, dtype=jnp.int32)[None, :] // G))           # (k, LANE)
    if fold:
        w = (onehot.astype(jnp.float32) * jnp.float32(inv_h)).astype(out_dtype)
        c = (-grid_row * jnp.float32(inv_h)).astype(jnp.float32)
    else:
        w = onehot.astype(out_dtype)                  # exact one-hot in any dtype
        c = grid_row.astype(jnp.float32)

    # ---- lane-dense views -----------------------------------------------------
    x_flat = x.reshape(-1).astype(out_dtype)
    m_pad = pl.cdiv(M, k) * k
    padded = m_pad != M
    if padded:
        # Rare ragged tail (< k elements): pad the cheap input, slice output once.
        x_flat = jnp.pad(x_flat, (0, m_pad - M))
    R = m_pad // k
    x2d = x_flat.reshape(R, k)

    # ---- block sizing with honest VMEM accounting -----------------------------
    itemsize = jnp.dtype(out_dtype).itemsize
    sub = max(8, 32 // itemsize)                      # sublane granularity: 8 f32 / 16 bf16
    in_lanes = pl.cdiv(k, 128) * 128                  # narrow x tile pads to 128 lanes in VMEM
    row_bytes = (in_lanes + lane) * itemsize          # true VMEM bytes per output row (in+out)

    vmem_cap = _vmem_capacity_bytes()
    out_blk_target = (8 << 20) if vmem_cap >= (96 << 20) else (4 << 20)   # v5e/v6e vs v7x
    budget = int(vmem_cap * 0.7)                      # double-buffered in+out budget

    tm = min(out_blk_target // (lane * itemsize), budget // (2 * row_bytes))
    tm = max(sub, (tm // sub) * sub)
    if R <= sub:
        tm = R                                        # tiny input: single full-extent block
    else:
        tm = min(tm, (R // sub) * sub)
        if tm >= R:                                   # would be 1 step: split so both v7x
            tm = pl.cdiv(pl.cdiv(R, 2), sub) * sub    # TensorCores get work + pipeline depth
    steps = pl.cdiv(R, tm)

    const_bytes = 2 * (pl.cdiv(k, sub) * sub * lane * itemsize + 8 * lane * 4)
    footprint = 2 * tm * row_bytes + const_bytes      # double-buffered blocks + constants
    vmem_limit = int(min(footprint + (6 << 20), vmem_cap * 0.9))

    out2d = pl.pallas_call(
        functools.partial(_rbf_kernel, fold=fold, inv_h=inv_h),
        out_shape=jax.ShapeDtypeStruct((R, lane), out_dtype),
        grid_spec=pltpu.PrefetchScalarGridSpec(
            num_scalar_prefetch=0,
            grid=(steps,),
            in_specs=[
                pl.BlockSpec((tm, k), lambda i: (i, 0)),
                pl.BlockSpec((k, lane), lambda i: (0, 0)),
                pl.BlockSpec((1, lane), lambda i: (0, 0)),
            ],
            out_specs=pl.BlockSpec((tm, lane), lambda i: (i, 0)),
        ),
        compiler_params=pltpu.CompilerParams(
            dimension_semantics=("parallel",),
            vmem_limit_bytes=vmem_limit,
        ),
    )(x2d, w, c)

    out = out2d.reshape(m_pad, G)                     # byte-identical view: free
    if padded:
        out = out[:M]                                 # only when x.size % k != 0
    return out.reshape(*orig_shape, G)


if __name__ == "__main__":
    # Module config (deterministic, from constructor args — no checkpoint load).
    grid_min, grid_max, num_grids = -2.0, 2.0, 8

    # Small input consistent with FastKAN usage: (batch, seq, hidden).
    key = jax.random.PRNGKey(0)
    x = jax.random.normal(key, (2, 8, 32), dtype=jnp.float32)

    out = jax.block_until_ready(radial_basis_function(x, grid_min, grid_max, num_grids))

    # Pure-JAX reference of the exact PyTorch semantics.
    h = (grid_max - grid_min) / (num_grids - 1)
    g = jnp.linspace(grid_min, grid_max, num_grids, dtype=jnp.float32)
    ref = jnp.exp(-(((x[..., None] - g) / h) ** 2))

    assert out.shape == (2, 8, 32, num_grids), out.shape
    assert out.dtype == jnp.float32
    assert jnp.allclose(out, ref, atol=1e-5, rtol=1e-5), float(jnp.max(jnp.abs(out - ref)))

    # Ragged fallback path: x.size not a multiple of the lane-group factor k.
    x2 = jax.random.normal(jax.random.PRNGKey(1), (3, 7, 5), dtype=jnp.float32)
    out2 = jax.block_until_ready(radial_basis_function(x2, grid_min, grid_max, num_grids))
    ref2 = jnp.exp(-(((x2[..., None] - g) / h) ** 2))
    assert out2.shape == (3, 7, 5, num_grids), out2.shape
    assert jnp.allclose(out2, ref2, atol=1e-5, rtol=1e-5)

    print("KERNEL_OK")
</pallas_src>

<mosaic_0001>
module attributes {stable_mosaic.version = 11 : i64} {
  func.func @_rbf_kernel(%arg0: i32, %arg1: memref<16x16xf32, #tpu.memory_space<vmem>>, %arg2: memref<16x128xf32, #tpu.memory_space<vmem>>, %arg3: memref<1x128xf32, #tpu.memory_space<vmem>>, %arg4: memref<16x128xf32, #tpu.memory_space<vmem>>) attributes {dimension_semantics = [#tpu.dimension_semantics<parallel>], iteration_bounds = array<i64: 2>, scalar_prefetch = 0 : i64, scratch_operands = 0 : i64, tpu.core_type = #tpu.core_type<tc>, window_params = [{transform_indices = @transform_0, window_bounds = array<i64: 16, 16>}, {pipeline_mode = #tpu.pipeline_mode<synchronous>, transform_indices = @transform_1, window_bounds = array<i64: 16, 128>}, {pipeline_mode = #tpu.pipeline_mode<synchronous>, transform_indices = @transform_2, window_bounds = array<i64: 1, 128>}, {transform_indices = @transform_3, window_bounds = array<i64: 16, 128>}]} {
    %c0 = arith.constant 0 : index
    %c0_0 = arith.constant 0 : index
    %0 = vector.load %arg1[%c0, %c0_0] : memref<16x16xf32, #tpu.memory_space<vmem>>, vector<16x16xf32>
    %c0_1 = arith.constant 0 : index
    %c0_2 = arith.constant 0 : index
    %1 = vector.load %arg2[%c0_1, %c0_2] : memref<16x128xf32, #tpu.memory_space<vmem>>, vector<16x128xf32>
    %cst = arith.constant dense<0.000000e+00> : vector<16x128xf32>
    %2 = tpu.matmul %0, %1, %cst {dimension_numbers = #tpu.dot_dimension_numbers<[1], [0], [0], [1], [0, 0, 1, 1], [], []>, precision = #tpu.contract_precision<fp32>} : vector<16x16xf32>, vector<16x128xf32>, vector<16x128xf32> -> vector<16x128xf32>
    %c0_3 = arith.constant 0 : index
    %c0_4 = arith.constant 0 : index
    %3 = vector.load %arg3[%c0_3, %c0_4] : memref<1x128xf32, #tpu.memory_space<vmem>>, vector<1x128xf32>
    %4 = vector.broadcast %3 : vector<1x128xf32> to vector<16x128xf32>
    %5 = arith.addf %2, %4 : vector<16x128xf32>
    %6 = arith.mulf %5, %5 : vector<16x128xf32>
    %cst_5 = arith.constant 0.000000e+00 : f32
    %7 = vector.broadcast %cst_5 : f32 to vector<16x128xf32>
    %8 = arith.subf %7, %6 : vector<16x128xf32>
    %9 = math.exp %8 : vector<16x128xf32>
    %c0_6 = arith.constant 0 : index
    %c0_7 = arith.constant 0 : index
    %10 = vector.load %arg4[%c0_6, %c0_7] : memref<16x128xf32, #tpu.memory_space<vmem>>, vector<16x128xf32>
    tpu.vector_store %arg4[%c0_6, %c0_7], %9 {strides = array<i32>} : memref<16x128xf32, #tpu.memory_space<vmem>>, vector<16x128xf32>,
    return
  }
  func.func @transform_0(%arg0: i32) -> (i32, i32) {
    %c0_i32 = arith.constant 0 : i32
    %c0_i32_0 = arith.constant 0 : i32
    return %arg0, %c0_i32 : i32, i32
  }
  func.func @transform_1(%arg0: i32) -> (i32, i32) {
    %c0_i32 = arith.constant 0 : i32
    %c0_i32_0 = arith.constant 0 : i32
    %c0_i32_1 = arith.constant 0 : i32
    return %c0_i32, %c0_i32_0 : i32, i32
  }
  func.func @transform_2(%arg0: i32) -> (i32, i32) {
    %c0_i32 = arith.constant 0 : i32
    %c0_i32_0 = arith.constant 0 : i32
    %c0_i32_1 = arith.constant 0 : i32
    return %c0_i32, %c0_i32_0 : i32, i32
  }
  func.func @transform_3(%arg0: i32) -> (i32, i32) {
    %c0_i32 = arith.constant 0 : i32
    %c0_i32_0 = arith.constant 0 : i32
    return %arg0, %c0_i32 : i32, i32
  }
}

</mosaic_0001>

<bundles_post_ra>
// kernel: radial_basis_function.1
= control target key start
LH: loop header
LB: loop body
LE: loop exit
PB: predicated region body
PF: predicated region fallthrough
CT: control target
= control target key end

     0   :  { %s914_s12 = smov 0   ;;  %s947_s0 = inlined_call_operand.vmem [shape: f32[32,16], index: 0, kind: input, shape index: {}]   ;;  %s948_s1 = inlined_call_operand.vmem [shape: f32[16,128], index: 1, kind: input, shape index: {}]   ;;  %s949_s2 = inlined_call_operand.vmem [shape: f32[1,128], index: 2, kind: input, shape index: {}]   ;;  %s950_s3 = inlined_call_operand.vmem [shape: f32[32,128], index: 3, kind: output, shape index: {}]  }
   0x1 LB: > { %s760_s13 = sadd.s32 4294967295, %s892_s12   ;;  %p764_p0 = scmp.ge.s32.totalorder %s892_s12, 1  ;;  %s892_s12 = sphi %s914_s12, %s13_s12  }
   0x2   : > { %p138_p1 = scmp.lt.s32.totalorder %s892_s12, 3 }
   0x4   : > { %p139_p2 = pnand %p764_p0, %p138_p1 }
   0x5   : > { %v176_v0 = vld [vmem:[%s948_s1] sm:$0xff] (!%p139_p2)  ;;  %v177_v1 = vld [vmem:[%s948_s1 + $0x8] sm:$0xff] (!%p139_p2)  ;;  %s765_s18 = sshll.u32 (!%p139_p2), %s760_s13, 1  ;;  %vm185_vm0 = vcmask (!%p139_p2), 130048  }
   0x6   : > { %142 = sbr.rel (%p139_p2) target bundleno = 281 (0x119), region = 32  ;;  %v193_v2 = vand.u32 (!%p139_p2), 4294901760, %v176_v0  ;;  %v196_v3 = vand.u32 (!%p139_p2), 4294901760, %v177_v1  ;;  %p163_p3 = scmp.lt.s32.totalorder (!%p139_p2), %s765_s18, 3  ;;  %v769_v32 = vld [vmem:[%s949_s2] ss:$0 sm:$0xff] (!%p139_p2) }
   0x8   : > { %v838_v4 = vpack.c.bf16 (!%p139_p2), %v196_v3, %v193_v2  ;;  %v281_v5 = vsub.f32 (!%p139_p2), %v176_v0, %v193_v2  ;;  %v288_v6 = vsub.f32 (!%p139_p2), %v177_v1, %v196_v3 }
   0xa   : > { %851 = vmatprep.subr.bf16.mxu0 (!%p139_p2), %v838_v4  ;;  %839 = vmatprep.subr.bf16.mxu1 (!%p139_p2), %v838_v4  ;;  %v282_v7 = vand.u32 (!%p139_p2), 4294901760, %v281_v5  ;;  %v289_v8 = vand.u32 (!%p139_p2), 4294901760, %v288_v6  ;;  %v846_v29 = vpack.c.bf16 (!%p139_p2), %v288_v6, %v281_v5 }
   0xb   : > { %853 = vmatpush3.bf16.msra.mxu0 (!%p139_p2), %v838_v4  ;;  %841 = vmatpush3.bf16.msra.mxu1 (!%p139_p2), %v838_v4 }
   0xc   : > { %v283_v11 = vsub.f32 (!%p139_p2), %v281_v5, %v282_v7  ;;  %v290_v12 = vsub.f32 (!%p139_p2), %v288_v6, %v289_v8  ;;  %v854_v13 = vpack.c.bf16 (!%p139_p2), %v289_v8, %v282_v7 }
   0xd   : > { %s952_s18 = smov (!%p163_p3, %s765_s18), 3 }
   0xe   : > { %s766_s19 = sshll.u32 %s952_s18, 3  ;;  %v284_v18 = vand.u32 4294901760, %v283_v11  ;;  %v291_v19 = vand.u32 4294901760, %v290_v12  ;;  %855 = vmatprep.subr.bf16.mxu0 %v854_v13 }
   0xf   : > { %s166_s22 = scalar_lea.vmem %s947_s0, %s766_s19  ;;  %s172_s27 = scalar_lea.vmem %s950_s3, %s766_s19 }
  0x10   : > { %v174_v9 = vld [vmem:[%s166_s22] sm:$0xff]  ;;  %v175_v10 = vld [vmem:[%s166_s22 + $0x8] sm:$0xff]  ;;  %v842_v22 = vpack.c.bf16 %v291_v19, %v284_v18 }
  0x11   : > { %v187_v14 = vsel %vm185_vm0, %v174_v9, 0  ;;  %v190_v15 = vsel %vm185_vm0, %v175_v10, 0 }
  0x12   : > { %v259_v16 = vand.u32 4294901760, %v187_v14  ;;  %v269_v17 = vand.u32 4294901760, %v190_v15  ;;  %843 = vmatprep.subr.bf16.mxu1 %v842_v22 }
  0x14   : > { %v260_v20 = vsub.f32 %v187_v14, %v259_v16  ;;  %v270_v21 = vsub.f32 %v190_v15, %v269_v17 }
  0x16   : > { %v261_v23 = vand.u32 4294901760, %v260_v20  ;;  %v271_v24 = vand.u32 4294901760, %v270_v21 }
  0x18   : > { %821 = vmatprep.mubr.f32.mxu0 %v261_v23  ;;  %v262_v25 = vsub.f32 %v260_v20, %v261_v23  ;;  %v272_v26 = vsub.f32 %v270_v21, %v271_v24 }
  0x19   : > { %822 = vmatmul.mubr.f32.vlgmr.msra.gmra.mrb[0].mxu0 %v271_v24 }
  0x1a   : > { %v263_v27 = vand.u32 4294901760, %v262_v25  ;;  %v273_v28 = vand.u32 4294901760, %v272_v26  ;;  %857 = vmatpush3.bf16.msra.mxu0 %v854_v13  ;;  %828 = vmatprep.mubr.f32.mxu0 %v259_v16 }
  0x1b   : > { %859 = vmatprep.subr.bf16.mxu0 %v838_v4 }
  0x1c   : > { %800 = vmatprep.mubr.f32.mxu1 %v263_v27 }
  0x1d   : > { %801 = vmatmul.mubr.f32.vlgmr.msra.gmra.mrb[0].mxu1 %v273_v28 }
  0x1e   : > { %845 = vmatpush3.bf16.msra.mxu1 %v842_v22  ;;  %807 = vmatprep.mubr.f32.mxu1 %v259_v16 }
  0x1f   : > { %847 = vmatprep.subr.bf16.mxu1 %v846_v29 }
  0x21   : > { %829 = vmatmul.mubr.f32.vlgmr.msra.gmra.mrb[0].mxu0 %v269_v17 }
  0x22   : > { %861 = vmatpush3.bf16.msra.mxu0 %v838_v4  ;;  %835 = vmatprep.mubr.f32.mxu0 %v259_v16 }
  0x25   : > { %808 = vmatmul.mubr.f32.vlgmr.msra.gmra.mrb[0].mxu1 %v269_v17 }
  0x26   : > { %849 = vmatpush3.bf16.msra.mxu1 %v846_v29  ;;  %814 = vmatprep.mubr.f32.mxu1 %v260_v20 }
  0x29   : > { %836 = vmatmul.mubr.f32.vlgmr.msra.gmra.mrb[0].mxu0 %v269_v17 }
  0x2d   : > { %815 = vmatmul.mubr.f32.vlgmr.msra.gmra.mrb[0].mxu1 %v270_v21 }
  0xfc   : > { %v837_v30 = vpop.f32.mrb[0].mxu0 }
  0xfd   : > { %v684_v31 = vpop.f32.mrb[1].mxu0 }
 0x100   : > { %v816_v33 = vpop.f32.mrb[0].mxu1 }
 0x101   : > { %v862_v34 = vadd.f32 %v816_v33, %v769_v32  ;;  %v438_v35 = vpop.f32.mrb[1].mxu1 }
 0x102   : > { %v864_v36 = vadd.f32 %v769_v32, %v438_v35 }
 0x103   : > { %v863_v37 = vadd.f32 %v862_v34, %v837_v30 }
 0x104   : > { %v865_v38 = vadd.f32 %v864_v36, %v684_v31 }
 0x105   : > { %v695_v39 = vmul.f32 %v863_v37, %v863_v37 }
 0x106   : > { %v694_v40 = vmul.f32 %v865_v38, %v865_v38 }
 0x107   : > { %v697_v41 = vsub.f32 0.0, %v695_v39 }
 0x108   : > { %v696_v42 = vsub.f32 0.0, %v694_v40 }
 0x109   : > { %v700_v43 = vmul.f32 1.442695, %v697_v41 }
 0x10a   : > { %v698_v44 = vmul.f32 1.442695, %v696_v42 }
 0x10c   : > { %882 = vpow2.f32 %v698_v44 }
 0x10d   : > { %884 = vpow2.f32 %v700_v43 }
 0x116   : > { %v883_v45 = vpop.eup %882 }
 0x117   : > { %v885_v46 = vpop.eup %884  ;;  %702 = vst [vmem:[%s172_s27] sm:$0xff] %v883_v45 }
 0x118   : > { %703 = vst [vmem:[%s172_s27 + $0x8] sm:$0xff] %v885_v46 }
 0x119 PF: > { %s13_s12 = sadd.s32 1, %s892_s12  }
 0x11a   : > { %p10_p4 = scmp.ge.s32.totalorder %s13_s12, 4  }
 0x11c   :  { %12 = sbr.rel (!%p10_p4) target bundleno = 1 (0x1), region = 62 }

</bundles_post_ra>
